<compile_context>
chip_gen: v5e
topology: v5e:2x2
jax: 0.10.0
libtpu: 0.0.40
codegen_flags: <defaults>
</compile_context>

<pallas_src>
import functools

import jax
import jax.numpy as jnp
from jax.experimental import pallas as pl
from jax.experimental.pallas import tpu as pltpu

SMOOTH = 1e-05


def _dice_partial_sums_kernel(x_ref, t_ref, xt_ref, den_ref, *,
                              hw, tile_hw, apply_sigmoid, mask_tail):
    """Per (bc-block i, hw-block j): per-row sums of p*t and p*p + t*t."""
    x = x_ref[...].astype(jnp.float32)        # (bc_tile, tile_hw), pixels on lanes
    t = t_ref[...].astype(jnp.float32)

    if apply_sigmoid:
        # sigmoid(x) == 0.5 * (tanh(x/2) + 1): one EUP transcendental instead of
        # exp + reciprocal.  Numerically equivalent.
        x = 0.5 * (jnp.tanh(0.5 * x) + 1.0)

    if mask_tail:
        # Only the ragged last spatial block needs masking (static skip else).
        # Masking x and t (2 selects) zeroes all three products downstream.
        j = pl.program_id(1)
        lane = jax.lax.broadcasted_iota(jnp.int32, x.shape, 1)
        valid = (j * tile_hw + lane) < hw
        x = jnp.where(valid, x, 0.0)
        t = jnp.where(valid, t, 0.0)

    xt = x * t
    den = x * x + t * t                       # fused: one cross-lane reduce below

    xt_ref[0, :, :] = jnp.sum(xt, axis=-1, keepdims=True)
    den_ref[0, :, :] = jnp.sum(den, axis=-1, keepdims=True)


def _round_up(x, m):
    return -(-x // m) * m


def _vmem_limit_bytes():
    """Generation-aware VMEM cap: half of physical capacity, never above 64 MiB.
    (v5e/v6e: 128 MiB physical -> 64 MiB; v7x: 64 MiB physical -> 32 MiB.)"""
    try:
        cap = int(pltpu.get_tpu_info().vmem_capacity_bytes)
    except Exception:
        cap = 64 * 1024 * 1024     # conservative fallback (v7x per-TC physical)
    return int(min(cap // 2, 64 * 1024 * 1024))


def _choose_tiles(bc, hw, x_itemsize, t_itemsize, vmem_limit):
    """Pick (bc_tile, tile_hw) so double-buffered x+t input blocks plus the
    in-kernel f32 cast/product temporaries fit ~3/4 of the explicit VMEM limit,
    keeping the lane (pixel) axis as wide as hw allows."""
    hw_pad = _round_up(hw, 128)
    budget = (vmem_limit * 3) // 4
    # bytes of VMEM per tile element:
    #   double-buffered input blocks for x and t  +  ~4 f32-sized temporaries
    per_elem = 2 * (x_itemsize + t_itemsize) + 4 * 4

    # Rows per block: full B*C when small (block dim == full dim is always
    # legal), otherwise a multiple-of-8 tile capped at 512 so the spatial lane
    # width never has to shrink for large B*C.
    bc_tile = bc if bc <= 512 else 512

    def max_hw_for(rows):
        return max(128, (budget // (rows * per_elem)) // 128 * 128)

    tile_hw = min(hw_pad, max_hw_for(bc_tile))
    # If even a (bc_tile, 128) tile overshoots, shrink the BC tile (multiple of 8).
    while bc_tile > 8 and bc_tile * tile_hw * per_elem > budget:
        bc_tile = max(8, _round_up(-(-bc_tile // 2), 8))
        tile_hw = min(hw_pad, max_hw_for(bc_tile))

    num_bc_blocks = -(-bc // bc_tile)
    num_hw_blocks = -(-hw // tile_hw)

    # v7x has 2 TensorCores per chip: guarantee >= 2 parallel grid steps.
    if num_bc_blocks * num_hw_blocks == 1:
        if hw_pad >= 256:
            tile_hw = max(128, (hw_pad // 2) // 128 * 128)
        elif bc >= 16:
            bc_tile = _round_up(-(-bc // 2), 8)
        num_bc_blocks = -(-bc // bc_tile)
        num_hw_blocks = -(-hw // tile_hw)

    return bc_tile, tile_hw, num_bc_blocks, num_hw_blocks


@functools.partial(jax.jit, static_argnames=("logit", "log"))
def soft_dice_loss(inputs, target, *, logit=True, log=False):
    b, c, h, w = inputs.shape
    bc = b * c
    hw = h * w

    # Contiguous reshapes only — no HBM copies in the wrapper.
    x = inputs.reshape(bc, hw)
    t = target.reshape(bc, hw)

    x_isz = jnp.dtype(x.dtype).itemsize
    t_isz = jnp.dtype(t.dtype).itemsize
    vmem_limit = _vmem_limit_bytes()
    bc_tile, tile_hw, num_bc_blocks, num_hw_blocks = _choose_tiles(
        bc, hw, x_isz, t_isz, vmem_limit)
    mask_tail = (hw % tile_hw) != 0

    kernel = functools.partial(
        _dice_partial_sums_kernel,
        hw=hw, tile_hw=tile_hw, apply_sigmoid=logit, mask_tail=mask_tail)

    out_shape = (
        jax.ShapeDtypeStruct((num_hw_blocks, bc, 1), jnp.float32),   # sum p*t
        jax.ShapeDtypeStruct((num_hw_blocks, bc, 1), jnp.float32),   # sum p*p + t*t
    )

    cost = pl.CostEstimate(
        flops=8 * bc * hw,
        transcendentals=(bc * hw) if logit else 0,
        bytes_accessed=bc * hw * (x_isz + t_isz) + 2 * num_hw_blocks * bc * 4,
    )

    sums_xt, sums_den = pl.pallas_call(
        kernel,
        out_shape=out_shape,
        grid_spec=pltpu.PrefetchScalarGridSpec(
            num_scalar_prefetch=0,
            grid=(num_bc_blocks, num_hw_blocks),
            in_specs=[
                pl.BlockSpec((bc_tile, tile_hw), lambda i, j: (i, j)),
                pl.BlockSpec((bc_tile, tile_hw), lambda i, j: (i, j)),
            ],
            out_specs=[
                pl.BlockSpec((1, bc_tile, 1), lambda i, j: (j, i, 0)),
                pl.BlockSpec((1, bc_tile, 1), lambda i, j: (j, i, 0)),
            ],
        ),
        compiler_params=pltpu.CompilerParams(
            dimension_semantics=("parallel", "parallel"),
            vmem_limit_bytes=vmem_limit),
        cost_estimate=cost,
    )(x, t)

    # Tiny final reduction + dice math in plain JAX (B*C elements).
    sxt = jnp.sum(sums_xt[:, :, 0], axis=0)     # (BC,)  sum p*t over pixels
    sden = jnp.sum(sums_den[:, :, 0], axis=0)   # (BC,)  sum p*p + t*t

    numerator = 2.0 * sxt
    dice = (numerator + SMOOTH) / (sden + SMOOTH)            # (BC,)
    dice = dice.reshape(b, c)
    # TODO(synk): class_weights branch (per-class weighted sum) not implemented;
    # module default is class_weights=None -> plain mean over classes.
    dice = jnp.mean(dice, axis=1)
    dice = jnp.mean(dice)
    # TODO(synk): the module's host-side `assert 0 <= dice <= 1` is a Python
    # check, not part of the computation; mirrored in the test harness below.
    if log:
        return -jnp.log(dice)
    return 1.0 - dice


def _soft_dice_loss_ref(inputs, target, *, logit=True, log=False):
    """Pure-JAX reference for validation."""
    x = inputs.astype(jnp.float32)
    t = target.astype(jnp.float32)
    if logit:
        x = jax.nn.sigmoid(x)
    numerator = 2.0 * jnp.sum(x * t, axis=(2, 3))
    denominator = jnp.sum(x * x, axis=(2, 3)) + jnp.sum(t * t, axis=(2, 3))
    dice = (numerator + SMOOTH) / (denominator + SMOOTH)
    dice = jnp.mean(dice, axis=1)
    dice = jnp.mean(dice)
    return -jnp.log(dice) if log else 1.0 - dice


if __name__ == "__main__":
    key = jax.random.PRNGKey(0)
    k1, k2, k3, k4 = jax.random.split(key, 4)

    # Case 1: aligned spatial extent, multi-block grid (hw=256 -> two 128-lane blocks).
    b, c, h, w = 2, 4, 16, 16
    logits = jax.random.normal(k1, (b, c, h, w), dtype=jnp.float32)
    target = (jax.random.uniform(k2, (b, c, h, w)) > 0.5).astype(jnp.float32)

    out = jax.block_until_ready(soft_dice_loss(logits, target, logit=True, log=False))
    ref = _soft_dice_loss_ref(logits, target, logit=True, log=False)
    assert jnp.allclose(out, ref, rtol=1e-5, atol=1e-6), (out, ref)
    dice_val = float(1.0 - out)
    assert 0.0 <= dice_val <= 1.0, "dice is out of bounds: %f" % dice_val

    # Case 1b: log=True branch.
    out_log = jax.block_until_ready(soft_dice_loss(logits, target, logit=True, log=True))
    ref_log = _soft_dice_loss_ref(logits, target, logit=True, log=True)
    assert jnp.allclose(out_log, ref_log, rtol=1e-5, atol=1e-6), (out_log, ref_log)

    # Case 2: ragged spatial extent (hw=255 not a multiple of 128) exercises the
    # in-kernel lane mask and the partial last block.
    b2, c2, h2, w2 = 2, 3, 17, 15
    logits2 = jax.random.normal(k3, (b2, c2, h2, w2), dtype=jnp.float32)
    target2 = (jax.random.uniform(k4, (b2, c2, h2, w2)) > 0.5).astype(jnp.float32)

    out2 = jax.block_until_ready(soft_dice_loss(logits2, target2, logit=True, log=False))
    ref2 = _soft_dice_loss_ref(logits2, target2, logit=True, log=False)
    assert jnp.allclose(out2, ref2, rtol=1e-5, atol=1e-6), (out2, ref2)
    dice_val2 = float(1.0 - out2)
    assert 0.0 <= dice_val2 <= 1.0, "dice is out of bounds: %f" % dice_val2

    print("KERNEL_OK")
</pallas_src>

<mosaic_0001>
module attributes {stable_mosaic.version = 11 : i64} {
  func.func @_dice_partial_sums_kernel(%arg0: i32, %arg1: i32, %arg2: memref<8x128xf32, #tpu.memory_space<vmem>>, %arg3: memref<8x128xf32, #tpu.memory_space<vmem>>, %arg4: memref<1x8x1xf32, #tpu.memory_space<vmem>>, %arg5: memref<1x8x1xf32, #tpu.memory_space<vmem>>) attributes {dimension_semantics = [#tpu.dimension_semantics<parallel>, #tpu.dimension_semantics<parallel>], iteration_bounds = array<i64: 1, 2>, scalar_prefetch = 0 : i64, scratch_operands = 0 : i64, tpu.core_type = #tpu.core_type<tc>, window_params = [{transform_indices = @transform_0, window_bounds = array<i64: 8, 128>}, {transform_indices = @transform_1, window_bounds = array<i64: 8, 128>}, {transform_indices = @transform_2, window_bounds = array<i64: 1, 8, 1>}, {transform_indices = @transform_3, window_bounds = array<i64: 1, 8, 1>}]} {
    %c0 = arith.constant 0 : index
    %c0_0 = arith.constant 0 : index
    %0 = vector.load %arg2[%c0, %c0_0] : memref<8x128xf32, #tpu.memory_space<vmem>>, vector<8x128xf32>
    %c0_1 = arith.constant 0 : index
    %c0_2 = arith.constant 0 : index
    %1 = vector.load %arg3[%c0_1, %c0_2] : memref<8x128xf32, #tpu.memory_space<vmem>>, vector<8x128xf32>
    %cst = arith.constant 5.000000e-01 : f32
    %2 = vector.broadcast %cst : f32 to vector<8x128xf32>
    %3 = arith.mulf %2, %0 : vector<8x128xf32>
    %4 = math.tanh %3 : vector<8x128xf32>
    %cst_3 = arith.constant 1.000000e+00 : f32
    %5 = vector.broadcast %cst_3 : f32 to vector<8x128xf32>
    %6 = arith.addf %4, %5 : vector<8x128xf32>
    %cst_4 = arith.constant 5.000000e-01 : f32
    %7 = vector.broadcast %cst_4 : f32 to vector<8x128xf32>
    %8 = arith.mulf %7, %6 : vector<8x128xf32>
    %9 = arith.mulf %8, %1 : vector<8x128xf32>
    %10 = arith.mulf %8, %8 : vector<8x128xf32>
    %11 = arith.mulf %1, %1 : vector<8x128xf32>
    %12 = arith.addf %10, %11 : vector<8x128xf32>
    %cst_5 = arith.constant dense<0.000000e+00> : vector<8xf32>
    %13 = vector.multi_reduction <add>, %9, %cst_5 [1] : vector<8x128xf32> to vector<8xf32>
    %14 = vector.shape_cast %13 : vector<8xf32> to vector<8x1xf32>
    %c0_6 = arith.constant 0 : index
    %c0_7 = arith.constant 0 : index
    %c0_8 = arith.constant 0 : index
    %15 = vector.load %arg4[%c0_6, %c0_7, %c0_8] : memref<1x8x1xf32, #tpu.memory_space<vmem>>, vector<1x8x1xf32>
    %16 = vector.shape_cast %15 : vector<1x8x1xf32> to vector<8x1xf32>
    %17 = vector.shape_cast %14 : vector<8x1xf32> to vector<1x8x1xf32>
    tpu.vector_store %arg4[%c0_6, %c0_7, %c0_8], %17 {strides = array<i32>} : memref<1x8x1xf32, #tpu.memory_space<vmem>>, vector<1x8x1xf32>,
    %cst_9 = arith.constant dense<0.000000e+00> : vector<8xf32>
    %18 = vector.multi_reduction <add>, %12, %cst_9 [1] : vector<8x128xf32> to vector<8xf32>
    %19 = vector.shape_cast %18 : vector<8xf32> to vector<8x1xf32>
    %c0_10 = arith.constant 0 : index
    %c0_11 = arith.constant 0 : index
    %c0_12 = arith.constant 0 : index
    %20 = vector.load %arg5[%c0_10, %c0_11, %c0_12] : memref<1x8x1xf32, #tpu.memory_space<vmem>>, vector<1x8x1xf32>
    %21 = vector.shape_cast %20 : vector<1x8x1xf32> to vector<8x1xf32>
    %22 = vector.shape_cast %19 : vector<8x1xf32> to vector<1x8x1xf32>
    tpu.vector_store %arg5[%c0_10, %c0_11, %c0_12], %22 {strides = array<i32>} : memref<1x8x1xf32, #tpu.memory_space<vmem>>, vector<1x8x1xf32>,
    return
  }
  func.func @transform_0(%arg0: i32, %arg1: i32) -> (i32, i32) {
    %c0_i32 = arith.constant 0 : i32
    return %arg0, %arg1 : i32, i32
  }
  func.func @transform_1(%arg0: i32, %arg1: i32) -> (i32, i32) {
    %c0_i32 = arith.constant 0 : i32
    return %arg0, %arg1 : i32, i32
  }
  func.func @transform_2(%arg0: i32, %arg1: i32) -> (i32, i32, i32) {
    %c0_i32 = arith.constant 0 : i32
    %c0_i32_0 = arith.constant 0 : i32
    return %arg1, %arg0, %c0_i32 : i32, i32, i32
  }
  func.func @transform_3(%arg0: i32, %arg1: i32) -> (i32, i32, i32) {
    %c0_i32 = arith.constant 0 : i32
    %c0_i32_0 = arith.constant 0 : i32
    return %arg1, %arg0, %c0_i32 : i32, i32, i32
  }
}

</mosaic_0001>

<bundles_post_ra>
// kernel: soft_dice_loss.1
= control target key start
LH: loop header
LB: loop body
LE: loop exit
PB: predicated region body
PF: predicated region fallthrough
CT: control target
= control target key end

     0   :  { %s484_s12 = smov 0   ;;  %s486_s13 = smov 0   ;;  %s523_s0 = inlined_call_operand.vmem [shape: f32[8,256], index: 0, kind: input, shape index: {}]   ;;  %s524_s1 = inlined_call_operand.vmem [shape: f32[8,256], index: 1, kind: input, shape index: {}]   ;;  %s525_s2 = inlined_call_operand.vmem [shape: f32[2,8,1], index: 2, kind: output, shape index: {0}]   ;;  %s526_s3 = inlined_call_operand.vmem [shape: f32[2,8,1], index: 3, kind: output, shape index: {1}]  }
   0x1   :  { %s488_s14 = smov 0  }
   0x2 LB: > { %s23_s15 = sadd.s32 1, %s458_s13  ;;  %p407_p0 = scmp.ge.s32.totalorder %s462_s14, 1  ;;  %s462_s14 = sphi %s488_s14, %s14_s14   ;;  %s458_s13 = sphi %s486_s13, %s528_s13   ;;  %s454_s12 = sphi %s484_s12, %s527_s12  }
   0x3   : > { %p24_p1 = scmp.ge.s32.totalorder %s23_s15, 2  ;;  %p176_p2 = scmp.lt.s32.totalorder %s462_s14, 3 }
   0x5   : > { %s530_s15 = smov (%p24_p1, %s23_s15), 0  ;;  %p177_p3 = pnand %p407_p0, %p176_p2 }
   0x6   : > { %p222_p4 = scmp.lt.s32.totalorder (!%p177_p3), %s454_s12, 1 }
   0x7   : > { %180 = sbr.rel (%p177_p3) target bundleno = 156 (0x9c), region = 28 }
   0xc   : > { %s532_s12 = smov (!%p222_p4, %s454_s12), 1  ;;  %vm262_vm0 = vcmask 7168  }
   0xd   : > { %s408_s16 = sshll.u32 %s532_s12, 3 }
   0xe   : > { %s227_s19 = scalar_lea.vmem %s523_s0, %s408_s16  ;;  %s235_s22 = scalar_lea.vmem %s524_s1, %s408_s16 }
   0xf   : > { %v250_v0 = vld [vmem:[%s227_s19] sm:$0xff]  ;;  %s242_s25 = scalar_lea.vmem %s525_s2, %s408_s16  ;;  %s249_s28 = scalar_lea.vmem %s526_s3, %s408_s16 }
  0x10   : > { %v252_v1 = vmul.f32 0.5, %v250_v0  ;;  %v251_v4 = vld [vmem:[%s235_s22] sm:$0xff] }
  0x11   : > { %v258_v7 = vmul.f32 %v251_v4, %v251_v4 }
  0x12   : > { %438 = vtanh.f32 %v252_v1 }
  0x18   : > { %v439_v2 = vpop.eup %438 }
  0x19   : > { %v254_v3 = vadd.f32 1.0, %v439_v2 }
  0x1b   : > { %v255_v5 = vmul.f32 0.5, %v254_v3 }
  0x1d   : > { %v256_v6 = vmul.f32 %v255_v5, %v251_v4  ;;  %v257_v8 = vmul.f32 %v255_v5, %v255_v5 }
  0x1f   : > { %260 = vadd.xlane.f32.xlu0 %v256_v6  ;;  %v259_v9 = vadd.f32 %v258_v7, %v257_v8 }
  0x27   : > { %264 = vadd.xlane.f32.xlu0 %v259_v9 }
  0x92   : > { %v261_v10 = vpop.xlane.xlu0 %260 }
  0x93   : > { %263 = vst.msk [vmem:[%s242_s25] sm:$0xff] %vm262_vm0, %v261_v10 }
  0x9a   : > { %v265_v11 = vpop.xlane.xlu0 %264 }
  0x9b   : > { %266 = vst.msk [vmem:[%s249_s28] sm:$0xff] %vm262_vm0, %v265_v11 }
  0x9c PF: > { %s14_s14 = sadd.s32 1, %s462_s14   ;;  %s527_s12 = smov %s458_s13 }
  0x9d   : > { %p11_p5 = scmp.ge.s32.totalorder %s14_s14, 4   ;;  %s528_s13 = smov %s530_s15 }
  0x9f   :  { %13 = sbr.rel (!%p11_p5) target bundleno = 2 (0x2), region = 73 }

</bundles_post_ra>
